<compile_context>
chip_gen: v6e
topology: v6e:2x2x1
jax: 0.10.0
libtpu: 0.0.40
codegen_flags: <defaults>
</compile_context>

<pallas_src>
import functools
import math

import jax
import jax.numpy as jnp
from jax.experimental import pallas as pl
from jax.experimental.pallas import tpu as pltpu


# ------------------------- hardware-aware sizing -----------------------------

def _vmem_limit_bytes():
    """Generation-aware scoped-VMEM request: ~80% of per-core VMEM, capped so
    the same request stays sane on v5e/v6e (128 MiB) and v7x (64 MiB)."""
    cap = 64 * 1024 * 1024
    try:
        cap = int(pltpu.get_tpu_info().vmem_capacity_bytes)
    except Exception:
        pass
    return max(32 * 1024 * 1024, min(int(cap * 0.8), 100 * 1024 * 1024))


def _div_tile(L, max_tile, quantum):
    """Largest divisor of L that is <= max_tile and a multiple of `quantum`.
    Falls back to the full extent L (always a legal full-extent block)."""
    if L <= max_tile:
        return L
    t = (max_tile // quantum) * quantum
    while t >= quantum:
        if L % t == 0:
            return t
        t -= quantum
    # TODO(synk): for awkward L (no quantum-multiple divisor) this returns the
    #             full extent, which can blow the VMEM budget for huge L.
    return L


def _pick_attn_tiles(BT, Lq, Lk, dim_w, dim_z, num_heads, vmem_limit):
    """Derive (tq, tkv) for Kernel B from a VMEM budget instead of fixed caps."""
    tq = _div_tile(Lq, 512, 8)
    tkv = _div_tile(Lk, 1024, 128)
    # v7x megacore balance: expose >= 2 steps on the sharded (parallel) axes.
    if BT * (Lq // tq) < 2 and Lq >= 16:
        tq = _div_tile(Lq, max(Lq // 2, 8), 8)

    def est(tq_, tkv_):
        inp = 2 * (tq_ * dim_w * 4) + 2 * (2 * dim_z * tkv_ * 2)  # Q + bf16 kT|v (x2 buffers)
        out = 2 * tq_ * dim_z * 4
        scratch = tq_ * dim_z * (2 + 4) + 2 * num_heads * tq_ * 4
        live = 4 * tq_ * tkv_ * 4 + 6 * tq_ * dim_z * 4            # scores/probs + epilogue temps
        wts = 2 * 2 * (dim_w * dim_z + 3 * dim_z * dim_z)          # bf16 weights (x2 buffers)
        return inp + out + scratch + live + wts

    budget = int(vmem_limit * 0.6)
    for _ in range(16):
        if est(tq, tkv) <= budget:
            break
        if tkv > 128 and tkv >= tq:
            new = _div_tile(Lk, max(tkv // 2, 128), 128)
            if new < tkv:
                tkv = new
                continue
        if tq > 8:
            new = _div_tile(Lq, max(tq // 2, 8), 8)
            if new < tq:
                tq = new
                continue
        break
    return tq, tkv


# ------------------------------ math helpers ---------------------------------

def _layer_norm(x, g, b, eps=1e-5):
    # matches torch.nn.LayerNorm (eps=1e-5), f32 statistics
    mu = jnp.mean(x, axis=-1, keepdims=True)
    var = jnp.mean((x - mu) ** 2, axis=-1, keepdims=True)
    return (x - mu) * jax.lax.rsqrt(var + eps) * g + b


def _gelu_erf(x):
    # Exact-form GELU 0.5*x*(1+erf(x/sqrt(2))) via the Abramowitz-Stegun 7.1.26
    # erf polynomial (|err| < 1.5e-7); only exp/mul/add/select, lowers cleanly.
    z = x * (1.0 / math.sqrt(2.0))
    a = jnp.abs(z)
    t = 1.0 / (1.0 + 0.3275911 * a)
    poly = t * (0.254829592 + t * (-0.284496736 + t * (1.421413741
               + t * (-1.453152027 + t * 1.061405429))))
    erf_abs = 1.0 - poly * jnp.exp(-(a * a))
    erf = jnp.where(z < 0.0, -erf_abs, erf_abs)
    return 0.5 * x * (1.0 + erf)


# -------------- Kernel A: fused K/V projection, head-major, bf16 -------------

def _kv_proj_kernel(kt_in_ref, v_in_ref, wkT_ref, wv_ref, kT_ref, v_ref, *,
                    num_heads):
    kin_t = kt_in_ref[0].astype(jnp.bfloat16)       # (dim_w, tk) channels-major
    vin = v_in_ref[0].astype(jnp.bfloat16)          # (tk, dim_v)
    for h in range(num_heads):
        # kT_h = (K_tile @ Wk_h)^T == Wk_h^T @ K_tile^T, no in-kernel transpose
        kT_ref[0, h] = jnp.dot(wkT_ref[h], kin_t,
                               preferred_element_type=jnp.float32
                               ).astype(jnp.bfloat16)         # (dh, tk)
        v_ref[0, h] = jnp.dot(vin, wv_ref[h],
                              preferred_element_type=jnp.float32
                              ).astype(jnp.bfloat16)          # (tk, dh)


def kv_project(K_t, V, kp):
    """K_t: (BT, dim_w, Lk) channels-major, V: (BT, Lk, dim_v)
       -> kT: (BT, H, dh, Lk) bf16, v: (BT, H, Lk, dh) bf16."""
    BT, dim_w, Lk = K_t.shape
    num_heads, dh, _ = kp["wkT"].shape
    dim_v = V.shape[-1]
    tk = _div_tile(Lk, 512, 128)
    vmem = _vmem_limit_bytes()
    return pl.pallas_call(
        functools.partial(_kv_proj_kernel, num_heads=num_heads),
        out_shape=(jax.ShapeDtypeStruct((BT, num_heads, dh, Lk), jnp.bfloat16),
                   jax.ShapeDtypeStruct((BT, num_heads, Lk, dh), jnp.bfloat16)),
        grid=(BT, Lk // tk),
        in_specs=[
            pl.BlockSpec((1, dim_w, tk), lambda b, r: (b, 0, r)),
            pl.BlockSpec((1, tk, dim_v), lambda b, r: (b, r, 0)),
            pl.BlockSpec((num_heads, dh, dim_w), lambda b, r: (0, 0, 0)),
            pl.BlockSpec((num_heads, dim_v, dh), lambda b, r: (0, 0, 0)),
        ],
        out_specs=(
            pl.BlockSpec((1, num_heads, dh, tk), lambda b, r: (b, 0, 0, r)),
            pl.BlockSpec((1, num_heads, tk, dh), lambda b, r: (b, 0, r, 0)),
        ),
        compiler_params=pltpu.CompilerParams(
            dimension_semantics=("parallel", "parallel"),
            vmem_limit_bytes=vmem),
    )(K_t, V, kp["wkT"], kp["wv"])


# ---- Kernel B: Q-proj + flash attention over Lk + Wo + LN + FFN + LN --------

def _attn_ffn_kernel(q_in_ref, kT_ref, v_ref, wq_ref, wo_ref, w1_ref, b1_ref,
                     w2_ref, b2_ref, g1_ref, be1_ref, g2_ref, be2_ref,
                     o_ref, q_sc, m_sc, l_sc, acc_sc, *, num_heads):
    kv_i = pl.program_id(2)

    @pl.when(kv_i == 0)
    def _():
        # Q projection for all heads (scale pre-folded into wq), once per tile.
        q_in = q_in_ref[0].astype(jnp.bfloat16)                 # (tq, dim_w)
        for h in range(num_heads):
            q_sc[h] = jnp.dot(q_in, wq_ref[h],
                              preferred_element_type=jnp.float32
                              ).astype(jnp.bfloat16)            # (tq, dh)
        m_sc[...] = jnp.full(m_sc.shape, -jnp.inf, dtype=m_sc.dtype)
        l_sc[...] = jnp.zeros(l_sc.shape, dtype=l_sc.dtype)
        acc_sc[...] = jnp.zeros(acc_sc.shape, dtype=acc_sc.dtype)

    # Online softmax over this Lk tile, all heads (head axis = outer ref axis,
    # so no lane slicing; kT already transposed so q @ kT is a plain matmul).
    for h in range(num_heads):
        s = jnp.dot(q_sc[h], kT_ref[0, h],
                    preferred_element_type=jnp.float32)         # (tq, tkv) f32
        m_prev = m_sc[h]
        m_new = jnp.maximum(m_prev, jnp.max(s, axis=-1, keepdims=True))
        alpha = jnp.exp(m_prev - m_new)
        p = jnp.exp(s - m_new)
        l_sc[h] = alpha * l_sc[h] + jnp.sum(p, axis=-1, keepdims=True)
        acc_sc[h] = alpha * acc_sc[h] + jnp.dot(
            p.astype(jnp.bfloat16), v_ref[0, h],
            preferred_element_type=jnp.float32)                 # (tq, dh)
        m_sc[h] = m_new

    @pl.when(kv_i == pl.num_programs(2) - 1)
    def _():
        # Heads -> model dim via per-head Wo contraction (accumulate, no concat)
        o = None
        for h in range(num_heads):
            oh = acc_sc[h] / l_sc[h]                            # exact divide
            oh = jnp.dot(oh.astype(jnp.bfloat16), wo_ref[h],
                         preferred_element_type=jnp.float32)    # (tq, dim_z)
            o = oh if o is None else o + oh
        # Fused epilogue (tile never leaves VMEM): LN1 + FFN + residual + LN2.
        o = _layer_norm(o, g1_ref[...], be1_ref[...])
        h1 = jnp.dot(o.astype(jnp.bfloat16), w1_ref[...],
                     preferred_element_type=jnp.float32) + b1_ref[...]
        h1 = _gelu_erf(h1)                                      # nn.GELU (erf)
        h2 = jnp.dot(h1.astype(jnp.bfloat16), w2_ref[...],
                     preferred_element_type=jnp.float32) + b2_ref[...]
        o = _layer_norm(o + h2, g2_ref[...], be2_ref[...])
        # TODO(synk): if deployed dim_z < 128, pad dim_z to 128 here for an
        #             unmasked lane-dense store (test dims keep full extent).
        o_ref[0] = o.astype(o_ref.dtype)


def attn_ffn(Q, kT, v, kp):
    """Q: (BT, Lq, dim_w), kT: (BT, H, dh, Lk), v: (BT, H, Lk, dh)
       -> (BT, Lq, dim_z) f32."""
    BT, Lq, dim_w = Q.shape
    num_heads, dh_wo, dim_z = kp["wo"].shape
    dh, Lk = kT.shape[2], kT.shape[3]
    assert dh == dh_wo and num_heads * dh == dim_z
    vmem = _vmem_limit_bytes()
    tq, tkv = _pick_attn_tiles(BT, Lq, Lk, dim_w, dim_z, num_heads, vmem)

    def _const_spec(shp):
        zeros = (0,) * len(shp)
        return pl.BlockSpec(shp, lambda b, r, k: zeros)

    kernel = functools.partial(_attn_ffn_kernel, num_heads=num_heads)
    # TODO(synk): single-buffer the constant-index kv/weight blocks
    #             (pl.Buffered(1)) on v7x once verified on the target jax rev.
    return pl.pallas_call(
        kernel,
        out_shape=jax.ShapeDtypeStruct((BT, Lq, dim_z), jnp.float32),
        grid=(BT, Lq // tq, Lk // tkv),
        in_specs=[
            pl.BlockSpec((1, tq, dim_w), lambda b, r, k: (b, r, 0)),        # Q
            pl.BlockSpec((1, num_heads, dh, tkv), lambda b, r, k: (b, 0, 0, k)),  # kT
            pl.BlockSpec((1, num_heads, tkv, dh), lambda b, r, k: (b, 0, k, 0)),  # v
            _const_spec((num_heads, dim_w, dh)),   # w_q (scaled, head-major)
            _const_spec((num_heads, dh, dim_z)),   # w_o (head-major)
            _const_spec((dim_z, dim_z)),           # ffn_w1
            _const_spec((1, dim_z)),               # ffn_b1
            _const_spec((dim_z, dim_z)),           # ffn_w2
            _const_spec((1, dim_z)),               # ffn_b2
            _const_spec((1, dim_z)),               # ln1_g
            _const_spec((1, dim_z)),               # ln1_b
            _const_spec((1, dim_z)),               # ln2_g
            _const_spec((1, dim_z)),               # ln2_b
        ],
        out_specs=pl.BlockSpec((1, tq, dim_z), lambda b, r, k: (b, r, 0)),
        scratch_shapes=[
            pltpu.VMEM((num_heads, tq, dh), jnp.bfloat16),   # q (head-major)
            pltpu.VMEM((num_heads, tq, 1), jnp.float32),     # running max
            pltpu.VMEM((num_heads, tq, 1), jnp.float32),     # running denom
            pltpu.VMEM((num_heads, tq, dh), jnp.float32),    # running PV acc
        ],
        compiler_params=pltpu.CompilerParams(
            dimension_semantics=("parallel", "parallel", "arbitrary"),
            vmem_limit_bytes=vmem),
    )(Q, kT, v, kp["wq"], kp["wo"], kp["ffn_w1"], kp["ffn_b1"],
      kp["ffn_w2"], kp["ffn_b2"], kp["ln1_g"], kp["ln1_b"],
      kp["ln2_g"], kp["ln2_b"])


# ------------------------------- JAX glue ------------------------------------

def from_6d_to_3d(x):
    # 'B T N C H W -> (B T) (N H W) C'  (layout plumbing kept outside kernels)
    B, T, N, C, H, W = x.shape
    x = jnp.transpose(x, (0, 1, 2, 4, 5, 3))          # B T N H W C
    return x.reshape(B * T, N * H * W, C)


def from_6d_to_3d_cmajor(x):
    # 'B T N C H W -> (B T) C (N H W)'  (channels-second; lets Kernel A emit a
    #  pre-transposed kT without any in-kernel XLU transpose)
    B, T, N, C, H, W = x.shape
    x = jnp.transpose(x, (0, 1, 3, 2, 4, 5))          # B T C N H W
    return x.reshape(B * T, C, N * H * W)


def from_3d_to_6d(x, B, T, H, W):
    # '(B T) (N H W) C -> B T N C H W'
    BT, NHW, C = x.shape
    N = NHW // (H * W)
    x = x.reshape(B, T, N, H, W, C)
    return jnp.transpose(x, (0, 1, 2, 5, 3, 4))


def prepare_level_params(p, num_heads):
    """Host-side, one-time weight transforms: fold 1/sqrt(dh) into w_q, reorder
    weights head-major, cast matmul weights to bf16 (LN/bias params stay f32)."""
    dim_w, dim_z = p["w_q"].shape
    assert dim_z % num_heads == 0
    dh = dim_z // num_heads
    dim_v = p["w_v"].shape[0]
    scale = 1.0 / math.sqrt(dh)
    bf16, f32 = jnp.bfloat16, jnp.float32
    wq = (p["w_q"] * scale).reshape(dim_w, num_heads, dh).transpose(1, 0, 2)
    wkT = p["w_k"].reshape(dim_w, num_heads, dh).transpose(1, 2, 0)
    wv = p["w_v"].reshape(dim_v, num_heads, dh).transpose(1, 0, 2)
    wo = p["w_o"].reshape(num_heads, dh, dim_z)
    vec = lambda a: a.reshape(1, dim_z).astype(f32)
    return dict(
        wq=wq.astype(bf16), wkT=wkT.astype(bf16), wv=wv.astype(bf16),
        wo=wo.astype(bf16),
        ffn_w1=p["ffn_w1"].astype(bf16), ffn_w2=p["ffn_w2"].astype(bf16),
        ffn_b1=vec(p["ffn_b1"]), ffn_b2=vec(p["ffn_b2"]),
        ln1_g=vec(p["ln1_g"]), ln1_b=vec(p["ln1_b"]),
        ln2_g=vec(p["ln2_g"]), ln2_b=vec(p["ln2_b"]),
    )


def cross_attention_level(Q, K_t, V, kp):
    kT, v = kv_project(K_t, V, kp)          # 1 fused launch (bf16 head-major)
    return attn_ffn(Q, kT, v, kp)           # 1 fused launch (flash + epilogue)


def vtm_matching_forward(params, W_Qs, W_Ss, Z_Ss, num_heads, attn_mask=None):
    # TODO(synk): attn_mask path (masked_fill(-inf) before the running max in
    #             _attn_ffn_kernel) not wired; only attn_mask=None supported.
    assert attn_mask is None
    n_levels = len(params)
    assert len(W_Qs) == n_levels
    B, T, N, _, H, W = W_Ss[-1].shape
    Z_Qs = []
    for level in range(n_levels):
        kp = prepare_level_params(params[level], num_heads)  # tiny; cache in prod
        Q = from_6d_to_3d(W_Qs[level])
        K_t = from_6d_to_3d_cmajor(W_Ss[level])
        V = from_6d_to_3d(Z_Ss[level])
        O = cross_attention_level(Q, K_t, V, kp)
        Z_Qs.append(from_3d_to_6d(O, B=B, T=T, H=H, W=W))
    return Z_Qs


# ---------------------------- parameter init ---------------------------------

def init_level_params(key, dim_w, dim_z):
    ks = jax.random.split(key, 6)
    s = 0.02
    f32 = jnp.float32
    return dict(
        w_q=(jax.random.normal(ks[0], (dim_w, dim_z)) * s).astype(f32),
        w_k=(jax.random.normal(ks[1], (dim_w, dim_z)) * s).astype(f32),
        w_v=(jax.random.normal(ks[2], (dim_z, dim_z)) * s).astype(f32),
        w_o=(jax.random.normal(ks[3], (dim_z, dim_z)) * s).astype(f32),
        ffn_w1=(jax.random.normal(ks[4], (dim_z, dim_z)) * s).astype(f32),
        ffn_b1=jnp.zeros((dim_z,), f32),
        ffn_w2=(jax.random.normal(ks[5], (dim_z, dim_z)) * s).astype(f32),
        ffn_b2=jnp.zeros((dim_z,), f32),
        ln1_g=jnp.ones((dim_z,), f32),
        ln1_b=jnp.zeros((dim_z,), f32),
        ln2_g=jnp.ones((dim_z,), f32),
        ln2_b=jnp.zeros((dim_z,), f32),
    )


# ----------------------------------- main -------------------------------------

if __name__ == "__main__":
    B, T, N, H, W = 2, 2, 2, 4, 4
    dim_w, dim_z = 32, 32
    n_levels, n_heads = 2, 4

    key = jax.random.PRNGKey(0)
    k_params, k_data = jax.random.split(key)

    params = [init_level_params(k, dim_w, dim_z)
              for k in jax.random.split(k_params, n_levels)]

    data_keys = jax.random.split(k_data, 3 * n_levels)
    W_Qs = [jax.random.normal(data_keys[3 * i + 0], (B, T, N, dim_w, H, W),
                              jnp.float32) for i in range(n_levels)]
    W_Ss = [jax.random.normal(data_keys[3 * i + 1], (B, T, N, dim_w, H, W),
                              jnp.float32) for i in range(n_levels)]
    Z_Ss = [jax.random.normal(data_keys[3 * i + 2], (B, T, N, dim_z, H, W),
                              jnp.float32) for i in range(n_levels)]

    Z_Qs = vtm_matching_forward(params, W_Qs, W_Ss, Z_Ss, num_heads=n_heads)
    for z in Z_Qs:
        jax.block_until_ready(z)
        assert z.shape == (B, T, N, dim_z, H, W)
        assert bool(jnp.all(jnp.isfinite(z)))
    print("KERNEL_OK")
</pallas_src>

<mosaic_0001>
module attributes {stable_mosaic.version = 11 : i64} {
  func.func @_kv_proj_kernel(%arg0: i32, %arg1: i32, %arg2: memref<1x32x32xf32, #tpu.memory_space<vmem>>, %arg3: memref<1x32x32xf32, #tpu.memory_space<vmem>>, %arg4: memref<4x8x32xbf16, #tpu.memory_space<vmem>>, %arg5: memref<4x32x8xbf16, #tpu.memory_space<vmem>>, %arg6: memref<1x4x8x32xbf16, #tpu.memory_space<vmem>>, %arg7: memref<1x4x32x8xbf16, #tpu.memory_space<vmem>>) attributes {dimension_semantics = [#tpu.dimension_semantics<parallel>, #tpu.dimension_semantics<parallel>], iteration_bounds = array<i64: 4, 1>, scalar_prefetch = 0 : i64, scratch_operands = 0 : i64, tpu.core_type = #tpu.core_type<tc>, window_params = [{transform_indices = @transform_0, window_bounds = array<i64: 1, 32, 32>}, {transform_indices = @transform_1, window_bounds = array<i64: 1, 32, 32>}, {pipeline_mode = #tpu.pipeline_mode<synchronous>, transform_indices = @transform_2, window_bounds = array<i64: 4, 8, 32>}, {pipeline_mode = #tpu.pipeline_mode<synchronous>, transform_indices = @transform_3, window_bounds = array<i64: 4, 32, 8>}, {transform_indices = @transform_4, window_bounds = array<i64: 1, 4, 8, 32>}, {transform_indices = @transform_5, window_bounds = array<i64: 1, 4, 32, 8>}]} {
    %c0 = arith.constant 0 : index
    %c0_0 = arith.constant 0 : index
    %c0_1 = arith.constant 0 : index
    %0 = vector.load %arg2[%c0, %c0_0, %c0_1] : memref<1x32x32xf32, #tpu.memory_space<vmem>>, vector<1x32x32xf32>
    %1 = vector.shape_cast %0 : vector<1x32x32xf32> to vector<32x32xf32>
    %2 = arith.truncf %1 : vector<32x32xf32> to vector<32x32xbf16>
    %c0_2 = arith.constant 0 : index
    %c0_3 = arith.constant 0 : index
    %c0_4 = arith.constant 0 : index
    %3 = vector.load %arg3[%c0_2, %c0_3, %c0_4] : memref<1x32x32xf32, #tpu.memory_space<vmem>>, vector<1x32x32xf32>
    %4 = vector.shape_cast %3 : vector<1x32x32xf32> to vector<32x32xf32>
    %5 = arith.truncf %4 : vector<32x32xf32> to vector<32x32xbf16>
    %c0_5 = arith.constant 0 : index
    %c0_6 = arith.constant 0 : index
    %c0_7 = arith.constant 0 : index
    %6 = vector.load %arg4[%c0_5, %c0_6, %c0_7] : memref<4x8x32xbf16, #tpu.memory_space<vmem>>, vector<1x8x32xbf16>
    %7 = vector.shape_cast %6 : vector<1x8x32xbf16> to vector<8x32xbf16>
    %cst = arith.constant dense<0.000000e+00> : vector<8x32xf32>
    %8 = tpu.matmul %7, %2, %cst {dimension_numbers = #tpu.dot_dimension_numbers<[1], [0], [0], [1], [0, 0, 1, 1], [], []>} : vector<8x32xbf16>, vector<32x32xbf16>, vector<8x32xf32> -> vector<8x32xf32>
    %9 = arith.truncf %8 : vector<8x32xf32> to vector<8x32xbf16>
    %c0_8 = arith.constant 0 : index
    %c0_9 = arith.constant 0 : index
    %c0_10 = arith.constant 0 : index
    %c0_11 = arith.constant 0 : index
    %10 = vector.load %arg6[%c0_8, %c0_9, %c0_10, %c0_11] : memref<1x4x8x32xbf16, #tpu.memory_space<vmem>>, vector<1x1x8x32xbf16>
    %11 = vector.shape_cast %10 : vector<1x1x8x32xbf16> to vector<8x32xbf16>
    %12 = vector.shape_cast %9 : vector<8x32xbf16> to vector<1x1x8x32xbf16>
    tpu.vector_store %arg6[%c0_8, %c0_9, %c0_10, %c0_11], %12 {strides = array<i32>} : memref<1x4x8x32xbf16, #tpu.memory_space<vmem>>, vector<1x1x8x32xbf16>,
    %c0_12 = arith.constant 0 : index
    %c0_13 = arith.constant 0 : index
    %c0_14 = arith.constant 0 : index
    %13 = vector.load %arg5[%c0_12, %c0_13, %c0_14] : memref<4x32x8xbf16, #tpu.memory_space<vmem>>, vector<1x32x8xbf16>
    %14 = vector.shape_cast %13 : vector<1x32x8xbf16> to vector<32x8xbf16>
    %cst_15 = arith.constant dense<0.000000e+00> : vector<32x8xf32>
    %15 = tpu.matmul %5, %14, %cst_15 {dimension_numbers = #tpu.dot_dimension_numbers<[1], [0], [0], [1], [0, 0, 1, 1], [], []>} : vector<32x32xbf16>, vector<32x8xbf16>, vector<32x8xf32> -> vector<32x8xf32>
    %16 = arith.truncf %15 : vector<32x8xf32> to vector<32x8xbf16>
    %c0_16 = arith.constant 0 : index
    %c0_17 = arith.constant 0 : index
    %c0_18 = arith.constant 0 : index
    %c0_19 = arith.constant 0 : index
    %17 = vector.load %arg7[%c0_16, %c0_17, %c0_18, %c0_19] : memref<1x4x32x8xbf16, #tpu.memory_space<vmem>>, vector<1x1x32x8xbf16>
    %18 = vector.shape_cast %17 : vector<1x1x32x8xbf16> to vector<32x8xbf16>
    %19 = vector.shape_cast %16 : vector<32x8xbf16> to vector<1x1x32x8xbf16>
    tpu.vector_store %arg7[%c0_16, %c0_17, %c0_18, %c0_19], %19 {strides = array<i32>} : memref<1x4x32x8xbf16, #tpu.memory_space<vmem>>, vector<1x1x32x8xbf16>,
    %c1 = arith.constant 1 : index
    %c0_20 = arith.constant 0 : index
    %c0_21 = arith.constant 0 : index
    %20 = vector.load %arg4[%c1, %c0_20, %c0_21] : memref<4x8x32xbf16, #tpu.memory_space<vmem>>, vector<1x8x32xbf16>
    %21 = vector.shape_cast %20 : vector<1x8x32xbf16> to vector<8x32xbf16>
    %cst_22 = arith.constant dense<0.000000e+00> : vector<8x32xf32>
    %22 = tpu.matmul %21, %2, %cst_22 {dimension_numbers = #tpu.dot_dimension_numbers<[1], [0], [0], [1], [0, 0, 1, 1], [], []>} : vector<8x32xbf16>, vector<32x32xbf16>, vector<8x32xf32> -> vector<8x32xf32>
    %23 = arith.truncf %22 : vector<8x32xf32> to vector<8x32xbf16>
    %c0_23 = arith.constant 0 : index
    %c1_24 = arith.constant 1 : index
    %c0_25 = arith.constant 0 : index
    %c0_26 = arith.constant 0 : index
    %24 = vector.load %arg6[%c0_23, %c1_24, %c0_25, %c0_26] : memref<1x4x8x32xbf16, #tpu.memory_space<vmem>>, vector<1x1x8x32xbf16>
    %25 = vector.shape_cast %24 : vector<1x1x8x32xbf16> to vector<8x32xbf16>
    %26 = vector.shape_cast %23 : vector<8x32xbf16> to vector<1x1x8x32xbf16>
    tpu.vector_store %arg6[%c0_23, %c1_24, %c0_25, %c0_26], %26 {strides = array<i32>} : memref<1x4x8x32xbf16, #tpu.memory_space<vmem>>, vector<1x1x8x32xbf16>,
    %c1_27 = arith.constant 1 : index
    %c0_28 = arith.constant 0 : index
    %c0_29 = arith.constant 0 : index
    %27 = vector.load %arg5[%c1_27, %c0_28, %c0_29] : memref<4x32x8xbf16, #tpu.memory_space<vmem>>, vector<1x32x8xbf16>
    %28 = vector.shape_cast %27 : vector<1x32x8xbf16> to vector<32x8xbf16>
    %cst_30 = arith.constant dense<0.000000e+00> : vector<32x8xf32>
    %29 = tpu.matmul %5, %28, %cst_30 {dimension_numbers = #tpu.dot_dimension_numbers<[1], [0], [0], [1], [0, 0, 1, 1], [], []>} : vector<32x32xbf16>, vector<32x8xbf16>, vector<32x8xf32> -> vector<32x8xf32>
    %30 = arith.truncf %29 : vector<32x8xf32> to vector<32x8xbf16>
    %c0_31 = arith.constant 0 : index
    %c1_32 = arith.constant 1 : index
    %c0_33 = arith.constant 0 : index
    %c0_34 = arith.constant 0 : index
    %31 = vector.load %arg7[%c0_31, %c1_32, %c0_33, %c0_34] : memref<1x4x32x8xbf16, #tpu.memory_space<vmem>>, vector<1x1x32x8xbf16>
    %32 = vector.shape_cast %31 : vector<1x1x32x8xbf16> to vector<32x8xbf16>
    %33 = vector.shape_cast %30 : vector<32x8xbf16> to vector<1x1x32x8xbf16>
    tpu.vector_store %arg7[%c0_31, %c1_32, %c0_33, %c0_34], %33 {strides = array<i32>} : memref<1x4x32x8xbf16, #tpu.memory_space<vmem>>, vector<1x1x32x8xbf16>,
    %c2 = arith.constant 2 : index
    %c0_35 = arith.constant 0 : index
    %c0_36 = arith.constant 0 : index
    %34 = vector.load %arg4[%c2, %c0_35, %c0_36] : memref<4x8x32xbf16, #tpu.memory_space<vmem>>, vector<1x8x32xbf16>
    %35 = vector.shape_cast %34 : vector<1x8x32xbf16> to vector<8x32xbf16>
    %cst_37 = arith.constant dense<0.000000e+00> : vector<8x32xf32>
    %36 = tpu.matmul %35, %2, %cst_37 {dimension_numbers = #tpu.dot_dimension_numbers<[1], [0], [0], [1], [0, 0, 1, 1], [], []>} : vector<8x32xbf16>, vector<32x32xbf16>, vector<8x32xf32> -> vector<8x32xf32>
    %37 = arith.truncf %36 : vector<8x32xf32> to vector<8x32xbf16>
    %c0_38 = arith.constant 0 : index
    %c2_39 = arith.constant 2 : index
    %c0_40 = arith.constant 0 : index
    %c0_41 = arith.constant 0 : index
    %38 = vector.load %arg6[%c0_38, %c2_39, %c0_40, %c0_41] : memref<1x4x8x32xbf16, #tpu.memory_space<vmem>>, vector<1x1x8x32xbf16>
    %39 = vector.shape_cast %38 : vector<1x1x8x32xbf16> to vector<8x32xbf16>
    %40 = vector.shape_cast %37 : vector<8x32xbf16> to vector<1x1x8x32xbf16>
    tpu.vector_store %arg6[%c0_38, %c2_39, %c0_40, %c0_41], %40 {strides = array<i32>} : memref<1x4x8x32xbf16, #tpu.memory_space<vmem>>, vector<1x1x8x32xbf16>,
    %c2_42 = arith.constant 2 : index
    %c0_43 = arith.constant 0 : index
    %c0_44 = arith.constant 0 : index
    %41 = vector.load %arg5[%c2_42, %c0_43, %c0_44] : memref<4x32x8xbf16, #tpu.memory_space<vmem>>, vector<1x32x8xbf16>
    %42 = vector.shape_cast %41 : vector<1x32x8xbf16> to vector<32x8xbf16>
    %cst_45 = arith.constant dense<0.000000e+00> : vector<32x8xf32>
    %43 = tpu.matmul %5, %42, %cst_45 {dimension_numbers = #tpu.dot_dimension_numbers<[1], [0], [0], [1], [0, 0, 1, 1], [], []>} : vector<32x32xbf16>, vector<32x8xbf16>, vector<32x8xf32> -> vector<32x8xf32>
    %44 = arith.truncf %43 : vector<32x8xf32> to vector<32x8xbf16>
    %c0_46 = arith.constant 0 : index
    %c2_47 = arith.constant 2 : index
    %c0_48 = arith.constant 0 : index
    %c0_49 = arith.constant 0 : index
    %45 = vector.load %arg7[%c0_46, %c2_47, %c0_48, %c0_49] : memref<1x4x32x8xbf16, #tpu.memory_space<vmem>>, vector<1x1x32x8xbf16>
    %46 = vector.shape_cast %45 : vector<1x1x32x8xbf16> to vector<32x8xbf16>
    %47 = vector.shape_cast %44 : vector<32x8xbf16> to vector<1x1x32x8xbf16>
    tpu.vector_store %arg7[%c0_46, %c2_47, %c0_48, %c0_49], %47 {strides = array<i32>} : memref<1x4x32x8xbf16, #tpu.memory_space<vmem>>, vector<1x1x32x8xbf16>,
    %c3 = arith.constant 3 : index
    %c0_50 = arith.constant 0 : index
    %c0_51 = arith.constant 0 : index
    %48 = vector.load %arg4[%c3, %c0_50, %c0_51] : memref<4x8x32xbf16, #tpu.memory_space<vmem>>, vector<1x8x32xbf16>
    %49 = vector.shape_cast %48 : vector<1x8x32xbf16> to vector<8x32xbf16>
    %cst_52 = arith.constant dense<0.000000e+00> : vector<8x32xf32>
    %50 = tpu.matmul %49, %2, %cst_52 {dimension_numbers = #tpu.dot_dimension_numbers<[1], [0], [0], [1], [0, 0, 1, 1], [], []>} : vector<8x32xbf16>, vector<32x32xbf16>, vector<8x32xf32> -> vector<8x32xf32>
    %51 = arith.truncf %50 : vector<8x32xf32> to vector<8x32xbf16>
    %c0_53 = arith.constant 0 : index
    %c3_54 = arith.constant 3 : index
    %c0_55 = arith.constant 0 : index
    %c0_56 = arith.constant 0 : index
    %52 = vector.load %arg6[%c0_53, %c3_54, %c0_55, %c0_56] : memref<1x4x8x32xbf16, #tpu.memory_space<vmem>>, vector<1x1x8x32xbf16>
    %53 = vector.shape_cast %52 : vector<1x1x8x32xbf16> to vector<8x32xbf16>
    %54 = vector.shape_cast %51 : vector<8x32xbf16> to vector<1x1x8x32xbf16>
    tpu.vector_store %arg6[%c0_53, %c3_54, %c0_55, %c0_56], %54 {strides = array<i32>} : memref<1x4x8x32xbf16, #tpu.memory_space<vmem>>, vector<1x1x8x32xbf16>,
    %c3_57 = arith.constant 3 : index
    %c0_58 = arith.constant 0 : index
    %c0_59 = arith.constant 0 : index
    %55 = vector.load %arg5[%c3_57, %c0_58, %c0_59] : memref<4x32x8xbf16, #tpu.memory_space<vmem>>, vector<1x32x8xbf16>
    %56 = vector.shape_cast %55 : vector<1x32x8xbf16> to vector<32x8xbf16>
    %cst_60 = arith.constant dense<0.000000e+00> : vector<32x8xf32>
    %57 = tpu.matmul %5, %56, %cst_60 {dimension_numbers = #tpu.dot_dimension_numbers<[1], [0], [0], [1], [0, 0, 1, 1], [], []>} : vector<32x32xbf16>, vector<32x8xbf16>, vector<32x8xf32> -> vector<32x8xf32>
    %58 = arith.truncf %57 : vector<32x8xf32> to vector<32x8xbf16>
    %c0_61 = arith.constant 0 : index
    %c3_62 = arith.constant 3 : index
    %c0_63 = arith.constant 0 : index
    %c0_64 = arith.constant 0 : index
    %59 = vector.load %arg7[%c0_61, %c3_62, %c0_63, %c0_64] : memref<1x4x32x8xbf16, #tpu.memory_space<vmem>>, vector<1x1x32x8xbf16>
    %60 = vector.shape_cast %59 : vector<1x1x32x8xbf16> to vector<32x8xbf16>
    %61 = vector.shape_cast %58 : vector<32x8xbf16> to vector<1x1x32x8xbf16>
    tpu.vector_store %arg7[%c0_61, %c3_62, %c0_63, %c0_64], %61 {strides = array<i32>} : memref<1x4x32x8xbf16, #tpu.memory_space<vmem>>, vector<1x1x32x8xbf16>,
    return
  }
  func.func @transform_0(%arg0: i32, %arg1: i32) -> (i32, i32, i32) {
    %c0_i32 = arith.constant 0 : i32
    %c0_i32_0 = arith.constant 0 : i32
    return %arg0, %c0_i32, %arg1 : i32, i32, i32
  }
  func.func @transform_1(%arg0: i32, %arg1: i32) -> (i32, i32, i32) {
    %c0_i32 = arith.constant 0 : i32
    %c0_i32_0 = arith.constant 0 : i32
    return %arg0, %arg1, %c0_i32 : i32, i32, i32
  }
  func.func @transform_2(%arg0: i32, %arg1: i32) -> (i32, i32, i32) {
    %c0_i32 = arith.constant 0 : i32
    %c0_i32_0 = arith.constant 0 : i32
    %c0_i32_1 = arith.constant 0 : i32
    %c0_i32_2 = arith.constant 0 : i32
    return %c0_i32, %c0_i32_0, %c0_i32_1 : i32, i32, i32
  }
  func.func @transform_3(%arg0: i32, %arg1: i32) -> (i32, i32, i32) {
    %c0_i32 = arith.constant 0 : i32
    %c0_i32_0 = arith.constant 0 : i32
    %c0_i32_1 = arith.constant 0 : i32
    %c0_i32_2 = arith.constant 0 : i32
    return %c0_i32, %c0_i32_0, %c0_i32_1 : i32, i32, i32
  }
  func.func @transform_4(%arg0: i32, %arg1: i32) -> (i32, i32, i32, i32) {
    %c0_i32 = arith.constant 0 : i32
    %c0_i32_0 = arith.constant 0 : i32
    %c0_i32_1 = arith.constant 0 : i32
    return %arg0, %c0_i32, %c0_i32_0, %arg1 : i32, i32, i32, i32
  }
  func.func @transform_5(%arg0: i32, %arg1: i32) -> (i32, i32, i32, i32) {
    %c0_i32 = arith.constant 0 : i32
    %c0_i32_0 = arith.constant 0 : i32
    %c0_i32_1 = arith.constant 0 : i32
    return %arg0, %c0_i32, %arg1, %c0_i32_0 : i32, i32, i32, i32
  }
}

</mosaic_0001>

<bundles_post_ra>
// kernel: tpu_custom_call.1
= control target key start
LH: loop header
LB: loop body
LE: loop exit
PB: predicated region body
PF: predicated region fallthrough
CT: control target
= control target key end

     0   :  { %s1818_s0 = inlined_call_operand.hbm [shape: f32[4,32,32], index: 0, kind: input, shape index: {}]   ;;  %s1819_s1 = inlined_call_operand.hbm [shape: f32[4,32,32], index: 1, kind: input, shape index: {}]   ;;  %s1820_s2 = inlined_call_operand.vmem [shape: bf16[4,8,32], index: 2, kind: input, shape index: {}]   ;;  %s1821_s3 = inlined_call_operand.vmem [shape: bf16[4,32,8], index: 3, kind: input, shape index: {}]   ;;  %s1822_s4 = inlined_call_operand.hbm [shape: bf16[4,4,8,32], index: 4, kind: output, shape index: {0}]   ;;  %s1823_s5 = inlined_call_operand.vmem [shape: bf16[4,4,32,8], index: 5, kind: output, shape index: {1}]  }
   0x1   :  { %1825 = sst [smem:[#allocation13_spill]] %s1818_s0 }
   0x2   :  { %11 = vsyncpa [#allocation3], 0 }
   0x3   :  { %13 = vsyncpa [#allocation3 + $0x1], 0 }
   0x4   :  { %14 = vsyncpa [#allocation6], 0 }
   0x5   :  { %16 = vsyncpa [#allocation6 + $0x1], 0 }
   0x6   :  { %17 = vsyncpa [#allocation4], 0 }
   0x7   :  { %19 = vsyncpa [#allocation4 + $0x1], 0  ;;  %s1524_s18 = smov 0   ;;  %s1526_s19 = smov 0  }
   0x8   :  { %s1528_s20 = smov 0   ;;  %s1530_s21 = smov 0  }
   0x9   :  { %s1532_s22 = smov 0   ;;  %s1534_s23 = smov 0  }
   0xa LB: > { %s1063_s24 = sadd.s32 4294967295, %s1483_s23   ;;  %s1064_s25 = sadd.s32 4294967294, %s1483_s23   ;;  %s1483_s23 = sphi %s1534_s23, %s25_s23   ;;  %s1479_s22 = sphi %s1532_s22, %s1841_s22   ;;  %s1475_s21 = sphi %s1530_s21, %s1840_s21   ;;  %s1471_s20 = sphi %s1528_s20, %s1839_s20   ;;  %s1467_s19 = sphi %s1526_s19, %s1838_s19   ;;  %s1463_s18 = sphi %s1524_s18, %s1837_s18  }
   0xb   : > { %s37_s26 = sadd.s32 1, %s1479_s22  ;;  %s46_s27 = sadd.s32 1, %s1471_s20 }
   0xc   : > { %p39_p0 = scmp.ge.s32.totalorder %s37_s26, 4  ;;  %p53_p1 = scmp.ne.s32.totalorder %s1471_s20, %s1467_s19 }
   0xd   : > { %p54_p2 = scmp.eq.s32.totalorder %s1483_s23, 0  ;;  %p59_p3 = scmp.ne.s32.totalorder %s1467_s19, %s1463_s18 }
   0xe   : > { %s1843_s26 = smov (%p39_p0, %s37_s26), 0  ;;  %p60_p5 = scmp.eq.s32.totalorder %s1063_s24, 0 }
   0xf   : > { %1826 = sst [smem:[#allocation11_spill]] %s1843_s26  ;;  %p1565_p4 = por %p54_p2, %p53_p1 }
  0x10   : > { %s41_s29 = ssub.s32 %s1479_s22, %s1843_s26  ;;  %p155_p6 = scmp.eq.s32.totalorder %s1063_s24, 3 }
  0x11   : > { %p44_p7 = scmp.eq.s32.totalorder %s41_s29, 0  ;;  %p1571_p8 = por %p60_p5, %p59_p3 }
  0x12   : > { %p1575_p9 = por %p155_p6, %p53_p1  ;;  %p161_p10 = scmp.eq.s32.totalorder %s1064_s25, 3 }
  0x13   : > { %s1580_s7 = scalar_select %p44_p7, %s1471_s20, %s46_s27  }
  0x14   : > { %p1582_p11 = por %p161_p10, %p59_p3  ;;  %p1279_p12 = scmp.lt.s32.totalorder %s1483_s23, 4 }
  0x15   : > { %1830 = sst [smem:[#allocation12_spill]] %s1580_s7  ;;  %s1588_s9 = sand.u32 1, %s1471_s20  }
  0x16   : > { %s1067_s10 = sshll.u32 %s1588_s9, 5  ;;  %s1150_s11 = sshll.u32 %s1479_s22, 9 }
  0x17   : > { %s1832_s0 = sld [smem:[#allocation13_spill]]  ;;  %s219_s15 = scalar_lea.vmem [#allocation2], %s1067_s10 }
  0x18   : > { %s227_s16 = sshll.u32 %s219_s15, 4  ;;  %p1601_p13 = pnand %p1279_p12, %p1565_p4  ;;  %s228_s16 = int_to_ptr.vmem [resolvable:$true] %s227_s16 }
  0x19   : > { %p1073_p0 = scmp.ge.s32.totalorder %s1483_s23, 1  ;;  %s216_s24 = scalar_lea.sflag [#allocation3], %s1588_s9 }
  0x1a   : > { %p1345_p1 = pneg %p1601_p13  ;;  %s1356_s25 = scalar_lea.vmem %s228_s16, 512 }
  0x1b   : > { %p1357_p2 = scmp.ne.s32.totalorder %s228_s16, %s1356_s25  ;;  %s1485_s27 = smov [#allocation2]  }
  0x1c   : > { %s1361_s29 = sshll.u32 %s1485_s27, 4  ;;  %s1362_s29 = int_to_ptr.vmem [resolvable:$false] %s1361_s29 }
  0x1d   : > { %s226_s14 = scalar_lea.hbm %s1832_s0, %s1150_s11  ;;  %p1359_p3 = pnand %p1357_p2, %p1345_p1 }
  0x1e   : > { %s1363_s28 = scalar_lea.vmem %s1362_s29, 1024  ;;  %p1364_p4 = scmp.lt.s32.totalorder %s228_s16, %s1362_s29 }
  0x1f   : > { %p1360_p5 = pneg %p1359_p3  ;;  %p1365_p6 = scmp.lt.s32.totalorder %s1363_s28, %s1356_s25 }
  0x21   : > { %p1366_p7 = por %p1365_p6, %p1364_p4 }
  0x23   : > { %p1367_p10 = pnand %p1366_p7, %p1360_p5 }
  0x25   : > { %1370 = shalt.err (!%p1367_p10)
}
  0x26   : > { %s1486_s12 = smov 128   ;;  %s1487_s13 = smov 8  }
  0x27   : > { %1271 = dma.hbm_to_vmem [thread:$0]  (!%p1601_p13), %s226_s14, 512, %s228_s16, %s216_s24, %s1486_s12, %s1486_s12, %s1487_s13  }
  0x28   : > { %p258_p12 = scmp.lt.s32.totalorder %s1483_s23, 5  ;;  %s249_s25 = scalar_lea.hbm %s1819_s1, %s1150_s11 }
  0x29   : > { %s241_s28 = scalar_lea.vmem [#allocation5], %s1067_s10  ;;  %s238_s26 = scalar_lea.sflag [#allocation6], %s1588_s9 }
  0x2a   : > { %p1622_p2 = pnand %p1073_p0, %p258_p12  ;;  %s250_s0 = sshll.u32 %s241_s28, 4  ;;  %s251_s0 = int_to_ptr.vmem [resolvable:$true] %s250_s0 }
  0x2b   : > { %s1384_s7 = scalar_lea.vmem %s251_s0, 512  ;;  %s1488_s14 = smov [#allocation5]  }
  0x2c   : > { %p1385_p3 = scmp.ne.s32.totalorder %s251_s0, %s1384_s7  ;;  %s1389_s16 = sshll.u32 %s1488_s14, 4  ;;  %s1390_s16 = int_to_ptr.vmem [resolvable:$false] %s1389_s16 }
  0x2d   : > { %s1391_s11 = scalar_lea.vmem %s1390_s16, 1024  ;;  %p1392_p6 = scmp.lt.s32.totalorder %s251_s0, %s1390_s16 }
  0x2e   : > { %p1387_p5 = pnand %p1385_p3, %p1345_p1  ;;  %p1393_p0 = scmp.lt.s32.totalorder %s1391_s11, %s1384_s7 }
  0x30   : > { %p1388_p4 = pneg %p1387_p5  ;;  %p1394_p7 = por %p1393_p0, %p1392_p6 }
  0x32   : > { %p1395_p10 = pnand %p1394_p7, %p1388_p4 }
  0x34   : > { %1398 = shalt.err (!%p1395_p10)
}
  0x35   : > { %1274 = dma.hbm_to_vmem [thread:$0]  (!%p1601_p13), %s249_s25, 512, %s251_s0, %s238_s26, %s1486_s12, %s1486_s12, %s1487_s13  }
  0x36   : > { %262 = sbr.rel (%p1622_p2) target bundleno = 310 (0x136), region = 36  ;;  %s1637_s9 = sand.u32 (!%p1622_p2), 1, %s1467_s19  }
  0x37   : > { %s1074_s10 = sshll.u32 (!%p1622_p2), %s1637_s9, 5  ;;  %s265_s24 = scalar_lea.sflag (!%p1622_p2), [#allocation3], %s1637_s9 }
  0x38   : > { %s268_s15 = scalar_lea.vmem (!%p1622_p2), [#allocation2], %s1074_s10 }
  0x3b   : > { %1450 = dma.done.wait (%p1571_p8), %s265_s24, 512  }
  0x3c   : > { %1452 = vsyncadd (%p1571_p8), %s265_s24, 4294966784  ;;  %s274_s0 = scalar_lea.sflag [#allocation6], %s1637_s9  ;;  %s277_s26 = scalar_lea.vmem [#allocation5], %s1074_s10 }
  0x3d   : > { %1454 = dma.done.wait (%p1571_p8), %s274_s0, 512  }
  0x3e   : > { %1456 = vsyncadd (%p1571_p8), %s274_s0, 4294966784  ;;  %v1489_v0 = vmov 0.0   ;;  %vm1490_vm0 = vmmov 0   ;;  %v332_v1 = vld [vmem:[%s268_s15 + $0x10] sm:$0xff]  ;;  %v333_v2 = vld [vmem:[%s268_s15 + $0x18] sm:$0xff]  ;;  %vm343_vm1 = vcmask 261120  }
  0x3f   : > { %1198 = vmatprep.subr.bf16.mxu0 %v1489_v0  ;;  %1202 = vmatprep.mubr.msk.bf16.mxu0 %vm1490_vm0, %v1489_v0  ;;  %v335_v3 = vpack.c.bf16 %v333_v2, %v332_v1  ;;  %v1335_v4 = vld [vmem:[%s1821_s3 + $0x8] sm:$0xff]   ;;  %v330_v5 = vld [vmem:[%s268_s15] sm:$0xff]  ;;  %v338_v11 = vld [vmem:[%s277_s26 + $0x10] sm:$0xff]  ;;  %p320_p8 = scmp.lt.s32.totalorder %s1475_s21, 3  ;;  %s1076_s28 = sshll.u32 %s1637_s9, 4  ;;  %vm388_vm2 = vcmask 257024  }
  0x40   : > { %v331_v6 = vld [vmem:[%s268_s15 + $0x8] sm:$0xff]  ;;  %1206 = vmatprep.subr.bf16.mxu1 %v1335_v4  ;;  %v1336_v8 = vld [vmem:[%s1821_s3] sm:$0xff]   ;;  %v339_v12 = vld [vmem:[%s277_s26 + $0x18] sm:$0xff]  ;;  %vm477_vm3 = vcmask 60416   ;;  %s1722_s24 = scalar_lea.vmem [#allocation7], %s1076_s28  ;;  %s1169_s0 = sshll.u32 %s1475_s21, 8 }
  0x41   : > { %1199 = vmatpush3.bf16.msra.mxu0 %v335_v3  ;;  %v334_v7 = vpack.c.bf16 %v331_v6, %v330_v5  ;;  %v336_v9 = vld [vmem:[%s277_s26] sm:$0xff]  ;;  %1207 = vmatpush3.bf16.msra.mxu1 %v1335_v4  ;;  %v337_v10 = vld [vmem:[%s277_s26 + $0x8] sm:$0xff]  ;;  %v1337_v14 = vld [vmem:[%s1821_s3 + $0x18] sm:$0xff]   ;;  %v341_v16 = vpack.c.bf16 %v339_v12, %v338_v11  ;;  %s321_s29 = scalar_select %p320_p8, %s1475_s21, 3 }
  0x42   : > { %1200 = vmatprep.subr.bf16.mxu0 %v1489_v0  ;;  %1208 = vmatprep.subr.bf16.mxu1 %v1336_v8  ;;  %v340_v13 = vpack.c.bf16 %v337_v10, %v336_v9  ;;  %v342_v15 = vld [vmem:[%s1820_s2] sm:$0xf]  ;;  %v1338_v17 = vld [vmem:[%s1821_s3 + $0x10] sm:$0xff]   ;;  %v1339_v18 = vld [vmem:[%s1821_s3 + $0x28] sm:$0xff]   ;;  %s911_s15 = sshll.u32 %s1722_s24, 4  ;;  %s1759_s21 = scalar_lea.hbm %s1822_s4, %s1169_s0  ;;  %s1752_s15 = int_to_ptr.vmem [resolvable:$true] %s911_s15 }
  0x43   : > { %v1088_v19 = vld [vmem:[%s1820_s2 + $0x4] sm:$0xf]  ;;  %v1341_v21 = vld [vmem:[%s1821_s3 + $0x38] sm:$0xff]   ;;  %v1107_v22 = vld [vmem:[%s1820_s2 + $0x8] sm:$0xf]  ;;  %s1152_s14 = sshll.u32 %s321_s29, 6 }
  0x44   : > { %1210 = vmatprep.mubr.msk.bf16.mxu1 %vm343_vm1, %v340_v13  ;;  %v1340_v20 = vld [vmem:[%s1821_s3 + $0x20] sm:$0xff]   ;;  %v1342_v23 = vld [vmem:[%s1821_s3 + $0x30] sm:$0xff]   ;;  %v1126_v24 = vld [vmem:[%s1820_s2 + $0xc] sm:$0xf]  ;;  %s1720_s10 = scalar_lea.vmem %s1823_s5, %s1152_s14  ;;  %s888_s17 = scalar_lea.sflag [#allocation4], %s1637_s9 }
  0x45   : > { %1201 = vmatpush3.bf16.msra.mxu0 %v334_v7  ;;  %1209 = vmatpush3.bf16.msra.mxu1 %v1336_v8  ;;  %s1399_s30 = scalar_lea.vmem %s1752_s15, 256  ;;  %s1491_s12 = smov [#allocation7]  }
  0x46   : > { %1214 = vmatprep.subr.bf16.mxu0 %v1489_v0  ;;  %1222 = vmatprep.subr.bf16.mxu1 %v1337_v14  ;;  %p1400_p13 = scmp.ne.s32.totalorder %s1752_s15, %s1399_s30  ;;  %s1403_s13 = sshll.u32 %s1491_s12, 4  ;;  %s1404_s13 = int_to_ptr.vmem [resolvable:$false] %s1403_s13 }
  0x47   : > { %s1405_s27 = scalar_lea.vmem %s1404_s13, 512  ;;  %p1406_p2 = scmp.lt.s32.totalorder %s1752_s15, %s1404_s13 }
  0x48   : > { %1203 = vmatmul.mubr.msk.bf16.vlgmr.msra.gmra.mxu0 %vm343_vm1, %v342_v15  ;;  %1211 = vmatmul.mubr.msk.bf16.vlgmr.msra.gmra.mxu1 %vm343_vm1, %v341_v16  ;;  %p1401_p1 = pnand %p1400_p13, %p1575_p9  ;;  %p1407_p3 = scmp.lt.s32.totalorder %s1405_s27, %s1399_s30 }
  0x49   : > { %1215 = vmatpush3.bf16.msra.mxu0 %v335_v3  ;;  %1223 = vmatpush3.bf16.msra.mxu1 %v1337_v14 }
  0x4a   : > { %1216 = vmatprep.subr.bf16.mxu0 %v1489_v0  ;;  %1224 = vmatprep.subr.bf16.mxu1 %v1338_v17  ;;  %p1402_p12 = pneg %p1401_p1  ;;  %p1408_p5 = por %p1407_p3, %p1406_p2 }
  0x4b   : > { %1218 = vmatprep.mubr.msk.bf16.mxu0 %vm1490_vm0, %v1489_v0  ;;  %1226 = vmatprep.mubr.msk.bf16.mxu1 %vm343_vm1, %v340_v13 }
  0x4c   : > { %p1409_p4 = pnand %p1408_p5, %p1402_p12 }
  0x4d   : > { %1217 = vmatpush3.bf16.msra.mxu0 %v334_v7  ;;  %1225 = vmatpush3.bf16.msra.mxu1 %v1338_v17 }
  0x4e   : > { %1230 = vmatprep.subr.bf16.mxu0 %v1489_v0  ;;  %1238 = vmatprep.subr.bf16.mxu1 %v1339_v18 }
  0x50   : > { %1219 = vmatmul.mubr.msk.bf16.vlgmr.msra.gmra.mxu0 %vm343_vm1, %v1088_v19  ;;  %1227 = vmatmul.mubr.msk.bf16.vlgmr.msra.gmra.mxu1 %vm343_vm1, %v341_v16 }
  0x51   : > { %1231 = vmatpush3.bf16.msra.mxu0 %v335_v3  ;;  %1239 = vmatpush3.bf16.msra.mxu1 %v1339_v18 }
  0x52   : > { %1232 = vmatprep.subr.bf16.mxu0 %v1489_v0  ;;  %1240 = vmatprep.subr.bf16.mxu1 %v1340_v20 }
  0x53   : > { %1234 = vmatprep.mubr.msk.bf16.mxu0 %vm1490_vm0, %v1489_v0  ;;  %1242 = vmatprep.mubr.msk.bf16.mxu1 %vm343_vm1, %v340_v13 }
  0x55   : > { %1233 = vmatpush3.bf16.msra.mxu0 %v334_v7  ;;  %1241 = vmatpush3.bf16.msra.mxu1 %v1340_v20 }
  0x56   : > { %1246 = vmatprep.subr.bf16.mxu0 %v1489_v0  ;;  %1254 = vmatprep.subr.bf16.mxu1 %v1341_v21 }
  0x58   : > { %1235 = vmatmul.mubr.msk.bf16.vlgmr.msra.gmra.mxu0 %vm343_vm1, %v1107_v22  ;;  %1243 = vmatmul.mubr.msk.bf16.vlgmr.msra.gmra.mxu1 %vm343_vm1, %v341_v16 }
  0x59   : > { %1247 = vmatpush3.bf16.msra.mxu0 %v335_v3  ;;  %1255 = vmatpush3.bf16.msra.mxu1 %v1341_v21 }
  0x5a   : > { %1248 = vmatprep.subr.bf16.mxu0 %v1489_v0  ;;  %1256 = vmatprep.subr.bf16.mxu1 %v1342_v23 }
  0x5b   : > { %1250 = vmatprep.mubr.msk.bf16.mxu0 %vm1490_vm0, %v1489_v0  ;;  %1258 = vmatprep.mubr.msk.bf16.mxu1 %vm343_vm1, %v340_v13 }
  0x5d   : > { %1249 = vmatpush3.bf16.msra.mxu0 %v334_v7  ;;  %1257 = vmatpush3.bf16.msra.mxu1 %v1342_v23 }
  0x60   : > { %1251 = vmatmul.mubr.msk.bf16.vlgmr.msra.gmra.mxu0 %vm343_vm1, %v1126_v24  ;;  %1259 = vmatmul.mubr.msk.bf16.vlgmr.msra.gmra.mxu1 %vm343_vm1, %v341_v16 }
 0x108   : > { %v381_v25 = vpop.f32.mrf.mxu0  ;;  %v1212_v27 = vpop.f32.mrf.mxu1 }
 0x109   : > { %v387_v26 = vpack.c.bf16 %v381_v25, %v381_v25  ;;  %v1155_v28 = vpack.c.bf16 %v1212_v27, %v1212_v27 }
 0x10a   : > { %v1204_v29 = vpop.f32.mrf.mxu0  ;;  %v446_v30 = vpop.f32.mrf.mxu1 }
 0x10b   : > { %389 = vst.msk [vmem:[%s1722_s24] sm:$0xf] %vm388_vm2, %v387_v26  ;;  %v1153_v31 = vpack.c.bf16 %v446_v30, %v446_v30 }
 0x10c   : > { %480 = vst.msk [vmem:[%s1720_s10 + $0x8] sm:$0xf] %vm477_vm3, %v1155_v28  ;;  %v384_v32 = vpop.f32.mrf.mxu0  ;;  %v1213_v33 = vpop.f32.mrf.mxu1 }
 0x10d   : > { %478 = vst.msk [vmem:[%s1720_s10] sm:$0xf] %vm477_vm3, %v1153_v31  ;;  %v1156_v34 = vpack.c.bf16 %v1213_v33, %v1213_v33 }
 0x10e   : > { %v1205_v35 = vpop.f32.mrf.mxu0  ;;  %v449_v36 = vpop.f32.mrf.mxu1 }
 0x10f   : > { %481 = vst.msk [vmem:[%s1720_s10 + $0xc] sm:$0xf] %vm477_vm3, %v1156_v34  ;;  %v1154_v37 = vpack.c.bf16 %v449_v36, %v449_v36 }
 0x110   : > { %v521_v38 = vpop.f32.mrf.mxu0  ;;  %v1228_v40 = vpop.f32.mrf.mxu1 }
 0x111   : > { %v527_v39 = vpack.c.bf16 %v521_v38, %v521_v38  ;;  %479 = vst.msk [vmem:[%s1720_s10 + $0x4] sm:$0xf] %vm477_vm3, %v1154_v37  ;;  %v1159_v41 = vpack.c.bf16 %v1228_v40, %v1228_v40 }
 0x112   : > { %v1220_v42 = vpop.f32.mrf.mxu0  ;;  %v581_v43 = vpop.f32.mrf.mxu1 }
 0x113   : > { %1090 = vst.msk [vmem:[%s1722_s24 + $0x4] sm:$0xf] %vm388_vm2, %v527_v39  ;;  %v1157_v44 = vpack.c.bf16 %v581_v43, %v581_v43 }
 0x114   : > { %1105 = vst.msk [vmem:[%s1720_s10 + $0x18] sm:$0xf] %vm477_vm3, %v1159_v41  ;;  %v524_v45 = vpop.f32.mrf.mxu0  ;;  %v1229_v46 = vpop.f32.mrf.mxu1 }
 0x115   : > { %1103 = vst.msk [vmem:[%s1720_s10 + $0x10] sm:$0xf] %vm477_vm3, %v1157_v44  ;;  %v1160_v47 = vpack.c.bf16 %v1229_v46, %v1229_v46 }
 0x116   : > { %v1221_v48 = vpop.f32.mrf.mxu0  ;;  %v584_v49 = vpop.f32.mrf.mxu1 }
 0x117   : > { %1106 = vst.msk [vmem:[%s1720_s10 + $0x1c] sm:$0xf] %vm477_vm3, %v1160_v47  ;;  %v1158_v50 = vpack.c.bf16 %v584_v49, %v584_v49 }
 0x118   : > { %v656_v51 = vpop.f32.mrf.mxu0  ;;  %v1244_v53 = vpop.f32.mrf.mxu1 }
 0x119   : > { %v662_v52 = vpack.c.bf16 %v656_v51, %v656_v51  ;;  %1104 = vst.msk [vmem:[%s1720_s10 + $0x14] sm:$0xf] %vm477_vm3, %v1158_v50  ;;  %v1163_v54 = vpack.c.bf16 %v1244_v53, %v1244_v53 }
 0x11a   : > { %v1236_v55 = vpop.f32.mrf.mxu0  ;;  %v716_v56 = vpop.f32.mrf.mxu1 }
 0x11b   : > { %1109 = vst.msk [vmem:[%s1722_s24 + $0x8] sm:$0xf] %vm388_vm2, %v662_v52  ;;  %v1161_v57 = vpack.c.bf16 %v716_v56, %v716_v56 }
 0x11c   : > { %1124 = vst.msk [vmem:[%s1720_s10 + $0x28] sm:$0xf] %vm477_vm3, %v1163_v54  ;;  %v659_v58 = vpop.f32.mrf.mxu0  ;;  %v1245_v59 = vpop.f32.mrf.mxu1 }
 0x11d   : > { %1122 = vst.msk [vmem:[%s1720_s10 + $0x20] sm:$0xf] %vm477_vm3, %v1161_v57  ;;  %v1164_v60 = vpack.c.bf16 %v1245_v59, %v1245_v59 }
 0x11e   : > { %v1237_v61 = vpop.f32.mrf.mxu0  ;;  %v719_v62 = vpop.f32.mrf.mxu1 }
 0x11f   : > { %1125 = vst.msk [vmem:[%s1720_s10 + $0x2c] sm:$0xf] %vm477_vm3, %v1164_v60  ;;  %v1162_v63 = vpack.c.bf16 %v719_v62, %v719_v62 }
 0x120   : > { %v791_v0 = vpop.f32.mrf.mxu0  ;;  %v1260_v2 = vpop.f32.mrf.mxu1 }
 0x121   : > { %v797_v1 = vpack.c.bf16 %v791_v0, %v791_v0  ;;  %1123 = vst.msk [vmem:[%s1720_s10 + $0x24] sm:$0xf] %vm477_vm3, %v1162_v63  ;;  %v1167_v3 = vpack.c.bf16 %v1260_v2, %v1260_v2 }
 0x122   : > { %v1252_v4 = vpop.f32.mrf.mxu0  ;;  %v851_v5 = vpop.f32.mrf.mxu1 }
 0x123   : > { %1128 = vst.msk [vmem:[%s1722_s24 + $0xc] sm:$0xf] %vm388_vm2, %v797_v1  ;;  %v1165_v6 = vpack.c.bf16 %v851_v5, %v851_v5 }
 0x124   : > { %1143 = vst.msk [vmem:[%s1720_s10 + $0x38] sm:$0xf] %vm477_vm3, %v1167_v3  ;;  %v794_v7 = vpop.f32.mrf.mxu0 }
 0x125   : > { %1412 = shalt.err (!%p1409_p4)
}
 0x126   : > { %s1413_s25 = scalar_lea.hbm %s1759_s21, 256  ;;  %s1417_s14 = scalar_lea.hbm %s1822_s4, 1024 }
 0x127   : > { %p1414_p6 = scmp.ne.s32.totalorder %s1759_s21, %s1413_s25  ;;  %p1418_p10 = scmp.lt.s32.totalorder %s1759_s21, %s1822_s4 }
 0x128   : > { %p1419_p8 = scmp.lt.s32.totalorder %s1417_s14, %s1413_s25 }
 0x129   : > { %p1415_p0 = pnand %p1414_p6, %p1575_p9 }
 0x12a   : > { %p1420_p13 = por %p1419_p8, %p1418_p10 }
 0x12b   : > { %p1416_p7 = pneg %p1415_p0 }
 0x12d   : > { %p1421_p1 = pnand %p1420_p13, %p1416_p7 }
 0x12f   : > { %1424 = shalt.err (!%p1421_p1)
}
 0x130   : > { %s1492_s24 = smov 64   ;;  %s1493_s0 = smov 4   ;;  %v1261_v8 = vpop.f32.mrf.mxu1  ;;  %1141 = vst.msk [vmem:[%s1720_s10 + $0x30] sm:$0xf] %vm477_vm3, %v1165_v6  ;;  %v1253_v10 = vpop.f32.mrf.mxu0 }
 0x131   : > { %1266 = dma.vmem_to_hbm [thread:$0]  (%p1575_p9), %s1752_s15, 256, %s1759_s21, %s888_s17, %s1492_s24, %s1492_s24, %s1493_s0   ;;  %v1168_v9 = vpack.c.bf16 %v1261_v8, %v1261_v8 }
 0x132   : > { %v854_v11 = vpop.f32.mrf.mxu1 }
 0x133   : > { %1144 = vst.msk [vmem:[%s1720_s10 + $0x3c] sm:$0xf] %vm477_vm3, %v1168_v9  ;;  %v1166_v12 = vpack.c.bf16 %v854_v11, %v854_v11 }
 0x135   : > { %1142 = vst.msk [vmem:[%s1720_s10 + $0x34] sm:$0xf] %vm477_vm3, %v1166_v12 }
 0x136 PF: > { %p1280_p12 = scmp.ge.s32.totalorder %s1483_s23, 2  ;;  %s930_s26 = sand.u32 1, %s1463_s18  }
 0x137   : > { %s931_s6 = scalar_lea.sflag [#allocation4], %s930_s26 }
 0x138   : > { %p1276_p2 = pnand %p1280_p12, %p1582_p11 }
 0x13a   : > { %p1277_p9 = pneg %p1276_p2 }
 0x13c   : > { %1458 = dma.done.wait (%p1277_p9), %s931_s6, 256  }
 0x13d   : > { %1460 = vsyncadd (%p1277_p9), %s931_s6, 4294967040  ;;  %s25_s23 = sadd.s32 1, %s1483_s23   ;;  %s1835_s9 = sld [smem:[#allocation12_spill]] }
 0x13e   : > { %p22_p3 = scmp.ge.s32.totalorder %s25_s23, 6   ;;  %s1836_s10 = sld [smem:[#allocation11_spill]] }
 0x13f   : > { %s1837_s18 = smov %s1467_s19  ;;  %s1838_s19 = smov %s1471_s20 }
 0x140   : > { %s1840_s21 = smov %s1479_s22  ;;  %24 = sbr.rel (!%p22_p3) target bundleno = 10 (0xa), region = 118 }
 0x143   : > { %s1839_s20 = smov %s1835_s9 }
 0x144   : > { %s1841_s22 = smov %s1836_s10 }
 0x145   :  { %948 = vsyncpa [#allocation3], 1 }
 0x146   :  { %950 = vsyncpa [#allocation3 + $0x1], 1 }
 0x147   :  { %951 = vsyncpa [#allocation6], 1 }
 0x148   :  { %953 = vsyncpa [#allocation6 + $0x1], 1 }
 0x149   :  { %954 = vsyncpa [#allocation4], 1 }
 0x14a   :  { %956 = vsyncpa [#allocation4 + $0x1], 1 }

</bundles_post_ra>
